<compile_context>
chip_gen: v7x
topology: tpu7x:2x2x1
jax: 0.10.0
libtpu: 0.0.40
codegen_flags: <defaults>
</compile_context>

<pallas_src>
import functools

import jax
import jax.numpy as jnp
from jax import lax
from jax.experimental import pallas as pl
from jax.experimental.pallas import tpu as pltpu


def _round_up(x, m):
    return (x + m - 1) // m * m


# ----------------------------- Pallas kernel -----------------------------

def _conv_kernel(x_ref, w_ref, b_ref, o_ref, *, K, S, Ho, Wo, activation):
    """One grid step = (batch element n, Cout tile j).

    x_ref: (S*S, Hph, Wph, Cin)  bf16  phase-decimated padded input (one image)
    w_ref: (K*K, Cin, TN)        bf16  BN-folded conv weights (one Cout tile)
    b_ref: (1, TN)               f32   BN-folded bias
    o_ref: (1, Ho*Wo, TN)        f32   output tile (flattened spatial)
    """
    M2 = Ho * Wo
    TN = o_ref.shape[-1]
    acc = jnp.zeros((M2, TN), jnp.float32)

    # Implicit im2col: unrolled reduction over the K*K taps.  Each tap is a
    # contiguous window of the phase-decimated input already sitting in VMEM,
    # so it goes straight to the MXU -- the patch matrix never touches HBM.
    for kh in range(K):
        for kw in range(K):
            ph = (kh % S) * S + (kw % S)           # which stride-phase plane
            h0, w0 = kh // S, kw // S              # window offset in that plane
            patch = x_ref[ph, h0:h0 + Ho, w0:w0 + Wo, :]        # (Ho, Wo, Cin)
            a = patch.reshape(M2, patch.shape[-1])               # (M2, Cin) bf16
            acc = acc + jnp.dot(a, w_ref[kh * K + kw],
                                preferred_element_type=jnp.float32)

    acc = acc + b_ref[...]                                        # folded BN bias
    if activation:
        # SiLU: x * sigmoid(x) = x * 1/(1+e^-x); reciprocal runs on the EUP slot.
        acc = acc * pl.reciprocal(1.0 + jnp.exp(-acc), approx=True)
    o_ref[0] = acc.astype(o_ref.dtype)


# ------------------------- host-side wrapper (glue) -------------------------

def conv_bn_silu(x_nhwc, w_taps, bias, K, S, P, activation,
                 out_dtype=jnp.float32):
    """Fused conv+BN+SiLU.  x_nhwc f32/bf16 NHWC, w_taps (K*K, Cin, Cout) bf16."""
    N, H, W, Cin = x_nhwc.shape
    KK, Cin2, Cout = w_taps.shape
    assert KK == K * K and Cin2 == Cin

    Hp, Wp = H + 2 * P, W + 2 * P
    Ho = (Hp - K) // S + 1
    Wo = (Wp - K) // S + 1
    assert Ho > 0 and Wo > 0

    # Phase decimation: xph[n, a*S+b, i, j, c] = x_padded[n, a + S*i, b + S*j, c].
    # Costs ~one copy of the input (identity reshape for S == 1) and makes every
    # (kh, kw) tap a contiguous window inside the kernel.
    Hph = (K - 1) // S + Ho
    Wph = (K - 1) // S + Wo
    He, We = S * Hph, S * Wph                      # extended padded extent
    xe = jnp.pad(x_nhwc, ((0, 0),
                          (P, max(P, He - H - P)),
                          (P, max(P, We - W - P)),
                          (0, 0)))[:, :He, :We, :]
    xph = xe.reshape(N, Hph, S, Wph, S, Cin)
    xph = jnp.transpose(xph, (0, 2, 4, 1, 3, 5))
    xph = xph.reshape(N * S * S, Hph, Wph, Cin).astype(jnp.bfloat16)

    # Cout tiling: full width when it fits (single lane-dense weight panel),
    # otherwise 256-wide tiles (multiple of 128 lanes).
    if Cout <= 512:
        TN, Np = Cout, Cout
    else:
        TN = 256
        Np = _round_up(Cout, TN)
    if Np != Cout:
        w_taps = jnp.pad(w_taps, ((0, 0), (0, 0), (0, Np - Cout)))
        bias = jnp.pad(bias, (0, Np - Cout))
    b2 = bias.astype(jnp.float32)[None, :]

    M2 = Ho * Wo
    S2 = S * S
    kernel = functools.partial(_conv_kernel, K=K, S=S, Ho=Ho, Wo=Wo,
                               activation=activation)
    out = pl.pallas_call(
        kernel,
        out_shape=jax.ShapeDtypeStruct((N, M2, Np), out_dtype),
        grid=(N, Np // TN),
        in_specs=[
            pl.BlockSpec((S2, Hph, Wph, Cin), lambda n, j: (n, 0, 0, 0)),
            pl.BlockSpec((K * K, Cin, TN), lambda n, j: (0, 0, j)),
            pl.BlockSpec((1, TN), lambda n, j: (0, j)),
        ],
        out_specs=pl.BlockSpec((1, M2, TN), lambda n, j: (n, 0, j)),
        compiler_params=pltpu.CompilerParams(
            dimension_semantics=("parallel", "parallel"),
            # Safe on v5e/v6e (128 MiB physical) and v7x (64 MiB per TC).
            vmem_limit_bytes=32 * 1024 * 1024),
    )(xph, w_taps, b2)

    out = out.reshape(N, Ho, Wo, Np)               # free row-major reshape
    if Np != Cout:
        out = out[..., :Cout]
    return out


# ------------------- deterministic parameters (Conv module) -------------------

def make_conv_params(key, cin, cout, k, s, p, activation=True):
    """Conv2d(bias=False) + BatchNorm2d (eval-mode stats folded) + SiLU."""
    kw_, kg, kb, km, kv = jax.random.split(key, 5)
    w = 0.05 * jax.random.normal(kw_, (cout, cin, k, k), jnp.float32)
    gamma = 1.0 + 0.1 * jax.random.normal(kg, (cout,), jnp.float32)
    beta = 0.1 * jax.random.normal(kb, (cout,), jnp.float32)
    mean = 0.1 * jax.random.normal(km, (cout,), jnp.float32)
    var = 1.0 + 0.1 * jnp.abs(jax.random.normal(kv, (cout,), jnp.float32))
    eps = 1e-5                                      # nn.BatchNorm2d default
    scale = gamma / jnp.sqrt(var + eps)
    # Fold BN scale into the conv weights; store as bf16 MXU operand laid out as
    # (K*K taps, Cin, Cout) so the kernel slices one full tap panel at a time.
    w_taps = jnp.transpose(w * scale[:, None, None, None], (2, 3, 1, 0))
    w_taps = w_taps.reshape(k * k, cin, cout).astype(jnp.bfloat16)
    b = beta - mean * scale
    return dict(w=w, gamma=gamma, beta=beta, mean=mean, var=var, eps=eps,
                w_taps=w_taps, b=b, k=k, s=s, p=p, act=activation)


def conv_forward(params, x_nchw):
    """Pallas forward of the Conv module.  NCHW in / NCHW out, like PyTorch."""
    x = jnp.transpose(x_nchw, (0, 2, 3, 1))        # NCHW -> NHWC
    y = conv_bn_silu(x, params['w_taps'], params['b'],
                     params['k'], params['s'], params['p'], params['act'])
    return jnp.transpose(y, (0, 3, 1, 2))          # NHWC -> NCHW


def conv_reference(params, x_nchw):
    """Pure-JAX f32 reference: lax.conv + eval-mode BN + exact SiLU."""
    y = lax.conv_general_dilated(
        x_nchw, params['w'],
        window_strides=(params['s'], params['s']),
        padding=((params['p'], params['p']), (params['p'], params['p'])),
        dimension_numbers=('NCHW', 'OIHW', 'NCHW'))
    scale = params['gamma'] / jnp.sqrt(params['var'] + params['eps'])
    shift = params['beta'] - params['mean'] * scale
    y = y * scale[None, :, None, None] + shift[None, :, None, None]
    if params['act']:
        y = y * jax.nn.sigmoid(y)
    return y


if __name__ == "__main__":
    root = jax.random.PRNGKey(0)
    kx, k1, k2 = jax.random.split(root, 3)

    # Small shapes consistent with the module: batch=2, Cin=4, 16x16 spatial.
    x = jax.random.normal(kx, (2, 4, 16, 16), jnp.float32)          # NCHW

    # Two Conv instances exercising both code paths:
    #   3x3 / stride 2 / pad 1 / SiLU, and 1x1 / stride 1 / pad 0 / no act.
    conv1 = make_conv_params(k1, cin=4, cout=32, k=3, s=2, p=1, activation=True)
    conv2 = make_conv_params(k2, cin=32, cout=64, k=1, s=1, p=0, activation=False)

    y1 = jax.jit(lambda a: conv_forward(conv1, a))(x)
    y2 = jax.jit(lambda a: conv_forward(conv2, a))(y1)
    jax.block_until_ready((y1, y2))

    assert y1.shape == (2, 32, 8, 8), y1.shape
    assert y2.shape == (2, 64, 8, 8), y2.shape
    assert bool(jnp.all(jnp.isfinite(y1))) and bool(jnp.all(jnp.isfinite(y2)))

    # Correctness vs. pure-JAX f32 reference (bf16 MXU operands + approximate
    # EUP reciprocal in SiLU give small, bounded differences).
    r1 = conv_reference(conv1, x)
    r2 = conv_reference(conv2, y1)
    e1 = float(jnp.max(jnp.abs(y1 - r1)))
    e2 = float(jnp.max(jnp.abs(y2 - r2)))
    assert e1 < 3e-2, f"layer1 max abs err {e1}"
    assert e2 < 3e-2, f"layer2 max abs err {e2}"

    print("KERNEL_OK")
</pallas_src>

<mosaic_0001>
module attributes {stable_mosaic.version = 11 : i64} {
  func.func @_conv_kernel(%arg0: i32, %arg1: i32, %arg2: memref<4x9x9x4xbf16, #tpu.memory_space<vmem>>, %arg3: memref<9x4x32xbf16, #tpu.memory_space<vmem>>, %arg4: memref<1x32xf32, #tpu.memory_space<vmem>>, %arg5: memref<1x64x32xf32, #tpu.memory_space<vmem>>) attributes {dimension_semantics = [#tpu.dimension_semantics<parallel>, #tpu.dimension_semantics<parallel>], iteration_bounds = array<i64: 2, 1>, scalar_prefetch = 0 : i64, scratch_operands = 0 : i64, tpu.core_type = #tpu.core_type<tc>, window_params = [{transform_indices = @transform_0, window_bounds = array<i64: 4, 9, 9, 4>}, {transform_indices = @transform_1, window_bounds = array<i64: 9, 4, 32>}, {transform_indices = @transform_2, window_bounds = array<i64: 1, 32>}, {transform_indices = @transform_3, window_bounds = array<i64: 1, 64, 32>}]} {
    %cst = arith.constant 0.000000e+00 : f32
    %0 = vector.broadcast %cst : f32 to vector<64x32xf32>
    %c0 = arith.constant 0 : index
    %c0_0 = arith.constant 0 : index
    %c0_1 = arith.constant 0 : index
    %c0_2 = arith.constant 0 : index
    %1 = vector.load %arg2[%c0, %c0_0, %c0_1, %c0_2] : memref<4x9x9x4xbf16, #tpu.memory_space<vmem>>, vector<1x8x8x4xbf16>
    %2 = vector.shape_cast %1 : vector<1x8x8x4xbf16> to vector<8x8x4xbf16>
    %3 = vector.shape_cast %2 : vector<8x8x4xbf16> to vector<64x4xbf16>
    %c0_3 = arith.constant 0 : index
    %c0_4 = arith.constant 0 : index
    %c0_5 = arith.constant 0 : index
    %4 = vector.load %arg3[%c0_3, %c0_4, %c0_5] : memref<9x4x32xbf16, #tpu.memory_space<vmem>>, vector<1x4x32xbf16>
    %5 = vector.shape_cast %4 : vector<1x4x32xbf16> to vector<4x32xbf16>
    %cst_6 = arith.constant dense<0.000000e+00> : vector<64x32xf32>
    %6 = tpu.matmul %3, %5, %cst_6 {dimension_numbers = #tpu.dot_dimension_numbers<[1], [0], [0], [1], [0, 0, 1, 1], [], []>} : vector<64x4xbf16>, vector<4x32xbf16>, vector<64x32xf32> -> vector<64x32xf32>
    %7 = arith.addf %0, %6 : vector<64x32xf32>
    %c1 = arith.constant 1 : index
    %c0_7 = arith.constant 0 : index
    %c0_8 = arith.constant 0 : index
    %c0_9 = arith.constant 0 : index
    %8 = vector.load %arg2[%c1, %c0_7, %c0_8, %c0_9] : memref<4x9x9x4xbf16, #tpu.memory_space<vmem>>, vector<1x8x8x4xbf16>
    %9 = vector.shape_cast %8 : vector<1x8x8x4xbf16> to vector<8x8x4xbf16>
    %10 = vector.shape_cast %9 : vector<8x8x4xbf16> to vector<64x4xbf16>
    %c1_10 = arith.constant 1 : index
    %c0_11 = arith.constant 0 : index
    %c0_12 = arith.constant 0 : index
    %11 = vector.load %arg3[%c1_10, %c0_11, %c0_12] : memref<9x4x32xbf16, #tpu.memory_space<vmem>>, vector<1x4x32xbf16>
    %12 = vector.shape_cast %11 : vector<1x4x32xbf16> to vector<4x32xbf16>
    %cst_13 = arith.constant dense<0.000000e+00> : vector<64x32xf32>
    %13 = tpu.matmul %10, %12, %cst_13 {dimension_numbers = #tpu.dot_dimension_numbers<[1], [0], [0], [1], [0, 0, 1, 1], [], []>} : vector<64x4xbf16>, vector<4x32xbf16>, vector<64x32xf32> -> vector<64x32xf32>
    %14 = arith.addf %7, %13 : vector<64x32xf32>
    %c0_14 = arith.constant 0 : index
    %c0_15 = arith.constant 0 : index
    %c1_16 = arith.constant 1 : index
    %c0_17 = arith.constant 0 : index
    %15 = vector.load %arg2[%c0_14, %c0_15, %c1_16, %c0_17] : memref<4x9x9x4xbf16, #tpu.memory_space<vmem>>, vector<1x8x8x4xbf16>
    %16 = vector.shape_cast %15 : vector<1x8x8x4xbf16> to vector<8x8x4xbf16>
    %17 = vector.shape_cast %16 : vector<8x8x4xbf16> to vector<64x4xbf16>
    %c2 = arith.constant 2 : index
    %c0_18 = arith.constant 0 : index
    %c0_19 = arith.constant 0 : index
    %18 = vector.load %arg3[%c2, %c0_18, %c0_19] : memref<9x4x32xbf16, #tpu.memory_space<vmem>>, vector<1x4x32xbf16>
    %19 = vector.shape_cast %18 : vector<1x4x32xbf16> to vector<4x32xbf16>
    %cst_20 = arith.constant dense<0.000000e+00> : vector<64x32xf32>
    %20 = tpu.matmul %17, %19, %cst_20 {dimension_numbers = #tpu.dot_dimension_numbers<[1], [0], [0], [1], [0, 0, 1, 1], [], []>} : vector<64x4xbf16>, vector<4x32xbf16>, vector<64x32xf32> -> vector<64x32xf32>
    %21 = arith.addf %14, %20 : vector<64x32xf32>
    %c2_21 = arith.constant 2 : index
    %c0_22 = arith.constant 0 : index
    %c0_23 = arith.constant 0 : index
    %c0_24 = arith.constant 0 : index
    %22 = vector.load %arg2[%c2_21, %c0_22, %c0_23, %c0_24] : memref<4x9x9x4xbf16, #tpu.memory_space<vmem>>, vector<1x8x8x4xbf16>
    %23 = vector.shape_cast %22 : vector<1x8x8x4xbf16> to vector<8x8x4xbf16>
    %24 = vector.shape_cast %23 : vector<8x8x4xbf16> to vector<64x4xbf16>
    %c3 = arith.constant 3 : index
    %c0_25 = arith.constant 0 : index
    %c0_26 = arith.constant 0 : index
    %25 = vector.load %arg3[%c3, %c0_25, %c0_26] : memref<9x4x32xbf16, #tpu.memory_space<vmem>>, vector<1x4x32xbf16>
    %26 = vector.shape_cast %25 : vector<1x4x32xbf16> to vector<4x32xbf16>
    %cst_27 = arith.constant dense<0.000000e+00> : vector<64x32xf32>
    %27 = tpu.matmul %24, %26, %cst_27 {dimension_numbers = #tpu.dot_dimension_numbers<[1], [0], [0], [1], [0, 0, 1, 1], [], []>} : vector<64x4xbf16>, vector<4x32xbf16>, vector<64x32xf32> -> vector<64x32xf32>
    %28 = arith.addf %21, %27 : vector<64x32xf32>
    %c3_28 = arith.constant 3 : index
    %c0_29 = arith.constant 0 : index
    %c0_30 = arith.constant 0 : index
    %c0_31 = arith.constant 0 : index
    %29 = vector.load %arg2[%c3_28, %c0_29, %c0_30, %c0_31] : memref<4x9x9x4xbf16, #tpu.memory_space<vmem>>, vector<1x8x8x4xbf16>
    %30 = vector.shape_cast %29 : vector<1x8x8x4xbf16> to vector<8x8x4xbf16>
    %31 = vector.shape_cast %30 : vector<8x8x4xbf16> to vector<64x4xbf16>
    %c4 = arith.constant 4 : index
    %c0_32 = arith.constant 0 : index
    %c0_33 = arith.constant 0 : index
    %32 = vector.load %arg3[%c4, %c0_32, %c0_33] : memref<9x4x32xbf16, #tpu.memory_space<vmem>>, vector<1x4x32xbf16>
    %33 = vector.shape_cast %32 : vector<1x4x32xbf16> to vector<4x32xbf16>
    %cst_34 = arith.constant dense<0.000000e+00> : vector<64x32xf32>
    %34 = tpu.matmul %31, %33, %cst_34 {dimension_numbers = #tpu.dot_dimension_numbers<[1], [0], [0], [1], [0, 0, 1, 1], [], []>} : vector<64x4xbf16>, vector<4x32xbf16>, vector<64x32xf32> -> vector<64x32xf32>
    %35 = arith.addf %28, %34 : vector<64x32xf32>
    %c2_35 = arith.constant 2 : index
    %c0_36 = arith.constant 0 : index
    %c1_37 = arith.constant 1 : index
    %c0_38 = arith.constant 0 : index
    %36 = vector.load %arg2[%c2_35, %c0_36, %c1_37, %c0_38] : memref<4x9x9x4xbf16, #tpu.memory_space<vmem>>, vector<1x8x8x4xbf16>
    %37 = vector.shape_cast %36 : vector<1x8x8x4xbf16> to vector<8x8x4xbf16>
    %38 = vector.shape_cast %37 : vector<8x8x4xbf16> to vector<64x4xbf16>
    %c5 = arith.constant 5 : index
    %c0_39 = arith.constant 0 : index
    %c0_40 = arith.constant 0 : index
    %39 = vector.load %arg3[%c5, %c0_39, %c0_40] : memref<9x4x32xbf16, #tpu.memory_space<vmem>>, vector<1x4x32xbf16>
    %40 = vector.shape_cast %39 : vector<1x4x32xbf16> to vector<4x32xbf16>
    %cst_41 = arith.constant dense<0.000000e+00> : vector<64x32xf32>
    %41 = tpu.matmul %38, %40, %cst_41 {dimension_numbers = #tpu.dot_dimension_numbers<[1], [0], [0], [1], [0, 0, 1, 1], [], []>} : vector<64x4xbf16>, vector<4x32xbf16>, vector<64x32xf32> -> vector<64x32xf32>
    %42 = arith.addf %35, %41 : vector<64x32xf32>
    %c0_42 = arith.constant 0 : index
    %c1_43 = arith.constant 1 : index
    %c0_44 = arith.constant 0 : index
    %c0_45 = arith.constant 0 : index
    %43 = vector.load %arg2[%c0_42, %c1_43, %c0_44, %c0_45] : memref<4x9x9x4xbf16, #tpu.memory_space<vmem>>, vector<1x8x8x4xbf16>
    %44 = vector.shape_cast %43 : vector<1x8x8x4xbf16> to vector<8x8x4xbf16>
    %45 = vector.shape_cast %44 : vector<8x8x4xbf16> to vector<64x4xbf16>
    %c6 = arith.constant 6 : index
    %c0_46 = arith.constant 0 : index
    %c0_47 = arith.constant 0 : index
    %46 = vector.load %arg3[%c6, %c0_46, %c0_47] : memref<9x4x32xbf16, #tpu.memory_space<vmem>>, vector<1x4x32xbf16>
    %47 = vector.shape_cast %46 : vector<1x4x32xbf16> to vector<4x32xbf16>
    %cst_48 = arith.constant dense<0.000000e+00> : vector<64x32xf32>
    %48 = tpu.matmul %45, %47, %cst_48 {dimension_numbers = #tpu.dot_dimension_numbers<[1], [0], [0], [1], [0, 0, 1, 1], [], []>} : vector<64x4xbf16>, vector<4x32xbf16>, vector<64x32xf32> -> vector<64x32xf32>
    %49 = arith.addf %42, %48 : vector<64x32xf32>
    %c1_49 = arith.constant 1 : index
    %c1_50 = arith.constant 1 : index
    %c0_51 = arith.constant 0 : index
    %c0_52 = arith.constant 0 : index
    %50 = vector.load %arg2[%c1_49, %c1_50, %c0_51, %c0_52] : memref<4x9x9x4xbf16, #tpu.memory_space<vmem>>, vector<1x8x8x4xbf16>
    %51 = vector.shape_cast %50 : vector<1x8x8x4xbf16> to vector<8x8x4xbf16>
    %52 = vector.shape_cast %51 : vector<8x8x4xbf16> to vector<64x4xbf16>
    %c7 = arith.constant 7 : index
    %c0_53 = arith.constant 0 : index
    %c0_54 = arith.constant 0 : index
    %53 = vector.load %arg3[%c7, %c0_53, %c0_54] : memref<9x4x32xbf16, #tpu.memory_space<vmem>>, vector<1x4x32xbf16>
    %54 = vector.shape_cast %53 : vector<1x4x32xbf16> to vector<4x32xbf16>
    %cst_55 = arith.constant dense<0.000000e+00> : vector<64x32xf32>
    %55 = tpu.matmul %52, %54, %cst_55 {dimension_numbers = #tpu.dot_dimension_numbers<[1], [0], [0], [1], [0, 0, 1, 1], [], []>} : vector<64x4xbf16>, vector<4x32xbf16>, vector<64x32xf32> -> vector<64x32xf32>
    %56 = arith.addf %49, %55 : vector<64x32xf32>
    %c0_56 = arith.constant 0 : index
    %c1_57 = arith.constant 1 : index
    %c1_58 = arith.constant 1 : index
    %c0_59 = arith.constant 0 : index
    %57 = vector.load %arg2[%c0_56, %c1_57, %c1_58, %c0_59] : memref<4x9x9x4xbf16, #tpu.memory_space<vmem>>, vector<1x8x8x4xbf16>
    %58 = vector.shape_cast %57 : vector<1x8x8x4xbf16> to vector<8x8x4xbf16>
    %59 = vector.shape_cast %58 : vector<8x8x4xbf16> to vector<64x4xbf16>
    %c8 = arith.constant 8 : index
    %c0_60 = arith.constant 0 : index
    %c0_61 = arith.constant 0 : index
    %60 = vector.load %arg3[%c8, %c0_60, %c0_61] : memref<9x4x32xbf16, #tpu.memory_space<vmem>>, vector<1x4x32xbf16>
    %61 = vector.shape_cast %60 : vector<1x4x32xbf16> to vector<4x32xbf16>
    %cst_62 = arith.constant dense<0.000000e+00> : vector<64x32xf32>
    %62 = tpu.matmul %59, %61, %cst_62 {dimension_numbers = #tpu.dot_dimension_numbers<[1], [0], [0], [1], [0, 0, 1, 1], [], []>} : vector<64x4xbf16>, vector<4x32xbf16>, vector<64x32xf32> -> vector<64x32xf32>
    %63 = arith.addf %56, %62 : vector<64x32xf32>
    %c0_63 = arith.constant 0 : index
    %c0_64 = arith.constant 0 : index
    %64 = vector.load %arg4[%c0_63, %c0_64] : memref<1x32xf32, #tpu.memory_space<vmem>>, vector<1x32xf32>
    %65 = vector.broadcast %64 : vector<1x32xf32> to vector<64x32xf32>
    %66 = arith.addf %63, %65 : vector<64x32xf32>
    %cst_65 = arith.constant 0.000000e+00 : f32
    %67 = vector.broadcast %cst_65 : f32 to vector<64x32xf32>
    %68 = arith.subf %67, %66 : vector<64x32xf32>
    %69 = math.exp %68 : vector<64x32xf32>
    %cst_66 = arith.constant 1.000000e+00 : f32
    %70 = vector.broadcast %cst_66 : f32 to vector<64x32xf32>
    %71 = arith.addf %70, %69 : vector<64x32xf32>
    %72 = tpu.reciprocal %71 {approx = true} : vector<64x32xf32> -> vector<64x32xf32>
    %73 = arith.mulf %66, %72 : vector<64x32xf32>
    %c0_67 = arith.constant 0 : index
    %c0_68 = arith.constant 0 : index
    %c0_69 = arith.constant 0 : index
    %74 = vector.load %arg5[%c0_67, %c0_68, %c0_69] : memref<1x64x32xf32, #tpu.memory_space<vmem>>, vector<1x64x32xf32>
    %75 = vector.shape_cast %74 : vector<1x64x32xf32> to vector<64x32xf32>
    %76 = vector.shape_cast %73 : vector<64x32xf32> to vector<1x64x32xf32>
    tpu.vector_store %arg5[%c0_67, %c0_68, %c0_69], %76 {strides = array<i32>} : memref<1x64x32xf32, #tpu.memory_space<vmem>>, vector<1x64x32xf32>,
    return
  }
  func.func @transform_0(%arg0: i32, %arg1: i32) -> (i32, i32, i32, i32) {
    %c0_i32 = arith.constant 0 : i32
    %c0_i32_0 = arith.constant 0 : i32
    %c0_i32_1 = arith.constant 0 : i32
    %c0_i32_2 = arith.constant 0 : i32
    return %arg0, %c0_i32, %c0_i32_0, %c0_i32_1 : i32, i32, i32, i32
  }
  func.func @transform_1(%arg0: i32, %arg1: i32) -> (i32, i32, i32) {
    %c0_i32 = arith.constant 0 : i32
    %c0_i32_0 = arith.constant 0 : i32
    %c0_i32_1 = arith.constant 0 : i32
    return %c0_i32, %c0_i32_0, %arg1 : i32, i32, i32
  }
  func.func @transform_2(%arg0: i32, %arg1: i32) -> (i32, i32) {
    %c0_i32 = arith.constant 0 : i32
    %c0_i32_0 = arith.constant 0 : i32
    return %c0_i32, %arg1 : i32, i32
  }
  func.func @transform_3(%arg0: i32, %arg1: i32) -> (i32, i32, i32) {
    %c0_i32 = arith.constant 0 : i32
    %c0_i32_0 = arith.constant 0 : i32
    return %arg0, %c0_i32, %arg1 : i32, i32, i32
  }
}

</mosaic_0001>

<bundles_post_ra>
// kernel: _lambda_.1
= control target key start
LH: loop header
LB: loop body
LE: loop exit
PB: predicated region body
PF: predicated region fallthrough
CT: control target
= control target key end

     0   :  { %8 = vsyncpa [#allocation3], 0  ;;  %s2795_s0 = inlined_call_operand.vmem [shape: bf16[8,9,9,4], index: 0, kind: input, shape index: {}]   ;;  %s2796_s1 = inlined_call_operand.vmem [shape: bf16[9,4,32], index: 1, kind: input, shape index: {}]   ;;  %s2797_s2 = inlined_call_operand.vmem [shape: f32[1,32], index: 2, kind: input, shape index: {}]   ;;  %s2798_s3 = inlined_call_operand.hbm [shape: f32[2,64,32], index: 3, kind: output, shape index: {}]  }
   0x1   :  { %10 = vsyncpa [#allocation3 + $0x1], 0  ;;  %s2394_s12 = smov 0   ;;  %s2396_s13 = smov 0  }
   0x2   :  { %s2398_s14 = smov 0   ;;  %s2400_s15 = smov 0  }
   0x3   :  { %s2402_s16 = smov 0   ;;  %s2404_s17 = smov 0  }
   0x4 LB: > { %s1797_s18 = sadd.s32 4294967295, %s2369_s17   ;;  %s1798_s19 = sadd.s32 4294967294, %s2369_s17   ;;  %s2369_s17 = sphi %s2404_s17, %s16_s17   ;;  %s2365_s16 = sphi %s2402_s16, %s2807_s16   ;;  %s2361_s15 = sphi %s2400_s15, %s2806_s15   ;;  %s2357_s14 = sphi %s2398_s14, %s2805_s14   ;;  %s2353_s13 = sphi %s2396_s13, %s2804_s13   ;;  %s2349_s12 = sphi %s2394_s12, %s2803_s12  }
   0x5   : > { %s28_s20 = sadd.s32 1, %s2365_s16  ;;  %s115_s21 = sadd.s32 1, %s2357_s14 }
   0x6   : > { %p30_p0 = scmp.ge.s32.totalorder %s28_s20, 2  ;;  %p125_p1 = scmp.ne.s32.totalorder %s2357_s14, %s2353_s13 }
   0x7   : > { %p126_p2 = scmp.eq.s32.totalorder %s1797_s18, 1  ;;  %p131_p3 = scmp.ne.s32.totalorder %s2353_s13, %s2349_s12 }
   0x8   : > { %s2809_s20 = smov (%p30_p0, %s28_s20), 0  ;;  %p132_p5 = scmp.eq.s32.totalorder %s1798_s19, 1 }
   0x9   : > { %p2434_p4 = por %p126_p2, %p125_p1  ;;  %s110_s23 = ssub.s32 %s2365_s16, %s2809_s20 }
   0xa   : > { %p1803_p6 = scmp.ge.s32.totalorder %s2369_s17, 1  ;;  %p113_p7 = scmp.eq.s32.totalorder %s110_s23, 0 }
   0xb   : > { %p2441_p8 = por %p132_p5, %p131_p3  ;;  %p173_p9 = scmp.lt.s32.totalorder %s2369_s17, 3 }
   0xc   : > { %s2447_s25 = scalar_select %p113_p7, %s2357_s14, %s115_s21  }
   0xd   : > { %p174_p10 = pnand %p1803_p6, %p173_p9 }
   0xe   : > { %v1815_v0 = vld [vmem:[%s2796_s1 + $0x2] sm:$0x3] (!%p174_p10)  ;;  %vm273_vm0 = vcmask (!%p174_p10), 1041408   ;;  %v2455_v1 = vld [vmem:[%s2796_s1 + $0x8] sm:$0x3] (!%p174_p10)  ;;  %s1805_s30 = sshll.u32 (!%p174_p10), %s2361_s15, 2 }
   0xf   : > { %177 = sbr.rel (%p174_p10) target bundleno = 375 (0x177), region = 32  ;;  %2167 = vmatprep.subr.msk.bf16.mxu1 (!%p174_p10), %vm273_vm0, %v1815_v0  ;;  %2171 = vmatprep.subr.msk.bf16.mxu0 (!%p174_p10), %vm273_vm0, %v2455_v1  ;;  %v275_v2 = vsel (!%p174_p10), %vm273_vm0, %v1815_v0, 0  ;;  %v2464_v3 = vsel (!%p174_p10), %vm273_vm0, %v2455_v1, 0  ;;  %p206_p11 = scmp.lt.s32.totalorder (!%p174_p10), %s1805_s30, 7  ;;  %v228_v4 = vld [vmem:[%s2796_s1] sm:$0x3] (!%p174_p10) }
  0x10   : > { %2012 = vmatpush3.bf16.msra.mxu1 (!%p174_p10), %v275_v2  ;;  %2052 = vmatpush3.bf16.msra.mxu0 (!%p174_p10), %v2464_v3  ;;  %v1891_v5 = vld [vmem:[%s2796_s1 + $0xa] sm:$0x3] (!%p174_p10)  ;;  %vm260_vm1 = vcmask (!%p174_p10), 31744   ;;  %v375_v6 = vsel (!%p174_p10), %vm273_vm0, %v228_v4, 0  ;;  %v1908_v9 = vld [vmem:[%s2796_s1 + $0xc] sm:$0x3] (!%p174_p10) }
  0x11   : > { %2168 = vmatprep.subr.msk.bf16.mxu1 (!%p174_p10), %vm273_vm0, %v228_v4  ;;  %2173 = vmatprep.subr.msk.bf16.mxu0 (!%p174_p10), %vm273_vm0, %v1891_v5  ;;  %v1068_v7 = vsel (!%p174_p10), %vm273_vm0, %v1891_v5, 0  ;;  %v1832_v10 = vld [vmem:[%s2796_s1 + $0x4] sm:$0x3] (!%p174_p10)  ;;  %vm458_vm2 = vsmask.f32 (!%p174_p10), 3328  ;;  %v2498_v15 = vsel (!%p174_p10), %vm273_vm0, %v1908_v9, 0 }
  0x12   : > { %vm459_vm3 = vsmask.f32 (!%p174_p10), 7440  ;;  %v2501_v16 = vsel (!%p174_p10), %vm273_vm0, %v1832_v10, 0  ;;  %s202_s7 = sand.u32 (!%p174_p10), 1, %s2353_s13   ;;  %vm1674_vm5 = vcmask (!%p174_p10), 261120   ;;  %s1965_s10 = sshll.u32 (!%p174_p10), %s2361_s15, 10 }
  0x13   : > { %vm2518_vm4 = vmor (!%p174_p10), %vm458_vm2, %vm459_vm3  ;;  %s2736_s21 = scalar_lea.hbm (!%p174_p10), %s2798_s3, %s1965_s10  ;;  %s2749_s15 = scalar_lea.sflag (!%p174_p10), [#allocation3], %s202_s7 }
  0x14   : > { %s2371_s26 = smov (!%p174_p10), [#allocation2]  }
  0x15   : > { %s2295_s27 = sshll.u32 (!%p174_p10), %s2371_s26, 4  ;;  %s2296_s27 = int_to_ptr.vmem [resolvable:$false] %s2295_s27 }
  0x16   : > { %s2811_s30 = smov (!%p206_p11, %s1805_s30), 7  ;;  %s2297_s28 = scalar_lea.vmem %s2296_s27, 2048 }
  0x17   : > { %s2177_s8 = smul.u32 72, %s2811_s30 }
  0x19   : > { %s2478_s11 = scalar_lea.vmem %s2795_s0, %s2177_s8  ;;  %s1804_s8 = sshll.u32 %s202_s7, 6 }
  0x1a   : > { %v2235_v8 = vld [vmem:[%s2478_s11 + $0x48] ss:$8 sps:$4 sm:$0xff]   ;;  %v2236_v11 = vld [vmem:[%s2478_s11 + $0xd8] ss:$8 sps:$4 sm:$0xff]   ;;  %v1876_v19 = vld [vmem:[%s2478_s11 + $0x94] sm:$0x1] }
  0x1b   : > { %2013 = vmatprep.mubr.msk.bf16.mxu1 %vm260_vm1, %v2235_v8  ;;  %v2237_v12 = vld [vmem:[%s2478_s11 + $0x58] ss:$8 sps:$4 sm:$0xff]   ;;  %2053 = vmatprep.mubr.msk.bf16.mxu0 %vm260_vm1, %v2236_v11  ;;  %v2238_v13 = vld [vmem:[%s2478_s11 + $0xe8] ss:$8 sps:$4 sm:$0xff]   ;;  %v1878_v21 = vld [vmem:[%s2478_s11 + $0x9c] sm:$0x1] }
  0x1c   : > { %2014 = vmatmul.mubr.msk.bf16.vlgmr.msra.gmra.mrb[0].mxu1 %vm260_vm1, %v2237_v12  ;;  %v2239_v14 = vld [vmem:[%s2478_s11 + $0x68] ss:$8 sps:$4 sm:$0xff]   ;;  %2054 = vmatmul.mubr.msk.bf16.vlgmr.msra.gmra.mrb[0].mxu0 %vm260_vm1, %v2238_v13  ;;  %v2240_v17 = vld [vmem:[%s2478_s11 + $0x78] ss:$8 sps:$4 sm:$0xff]   ;;  %v939_v24 = vshll.u32 %v1876_v19, 16  ;;  %v953_v27 = vshll.u32 %v1878_v21, 16 }
  0x1d   : > { %2022 = vmatpush3.bf16.msra.mxu1 %v375_v6  ;;  %2062 = vmatpush3.bf16.msra.mxu0 %v1068_v7  ;;  %v1875_v18 = vld [vmem:[%s2478_s11 + $0x90] sm:$0xf]  ;;  %v1877_v20 = vld [vmem:[%s2478_s11 + $0x98] sm:$0xf]  ;;  %v1879_v28 = vld [vmem:[%s2478_s11 + $0xa0] sm:$0xf] }
  0x1e   : > { %2017 = vmatprep.mubr.msk.bf16.mxu1 %vm260_vm1, %v2239_v14  ;;  %v930_v22 = vshrl.u32 %v1875_v18, 16  ;;  %v933_v23 = vshll.u32 %v1875_v18, 16  ;;  %v944_v25 = vshrl.u32 %v1877_v20, 16  ;;  %2174 = vmatprep.subr.msk.bf16.mxu0 %vm273_vm0, %v1908_v9  ;;  %v947_v26 = vshll.u32 %v1877_v20, 16  ;;  %v1880_v29 = vld [vmem:[%s2478_s11 + $0xa4] sm:$0x1] }
  0x1f   : > { %2169 = vmatprep.subr.msk.bf16.mxu1 %vm273_vm0, %v1832_v10  ;;  %v941_v32 = vrot.slane %v939_v24, 5  ;;  %v1881_v34 = vld [vmem:[%s2478_s11 + $0xa8] sm:$0xf]  ;;  %v955_v36 = vrot.slane %v953_v27, 5  ;;  %v1882_v37 = vld [vmem:[%s2478_s11 + $0xac] sm:$0x1] }
  0x20   : > { %v932_v30 = vrot.slane %v930_v22, 4  ;;  %v935_v31 = vrot.slane %v933_v23, 5  ;;  %v946_v33 = vrot.slane %v944_v25, 4  ;;  %v949_v35 = vrot.slane %v947_v26, 5  ;;  %v2241_v53 = vld [vmem:[%s2478_s11] ss:$8 sps:$4 sm:$0xff]  }
  0x21   : > { %v958_v38 = vshrl.u32 %v1879_v28, 16  ;;  %v961_v39 = vshll.u32 %v1879_v28, 16  ;;  %v967_v41 = vshll.u32 %v1880_v29, 16  ;;  %v972_v42 = vshrl.u32 %v1881_v34, 16  ;;  %v2242_v59 = vld [vmem:[%s2478_s11 + $0x10] ss:$8 sps:$4 sm:$0xff]  }
  0x22   : > { %v936_v40 = vor.u32 %v935_v31, %v932_v30  ;;  %v975_v43 = vshll.u32 %v1881_v34, 16  ;;  %v950_v45 = vor.u32 %v949_v35, %v946_v33  ;;  %v981_v48 = vshll.u32 %v1882_v37, 16  ;;  %v1883_v60 = vld [vmem:[%s2478_s11 + $0xb0] sm:$0xf]  ;;  %v1884_v61 = vld [vmem:[%s2478_s11 + $0xb4] sm:$0x1] }
  0x23   : > { %v960_v46 = vrot.slane %v958_v38, 4  ;;  %v963_v47 = vrot.slane %v961_v39, 5  ;;  %v969_v50 = vrot.slane %v967_v41, 5  ;;  %v974_v51 = vrot.slane %v972_v42, 4  ;;  %v1885_v0 = vld [vmem:[%s2478_s11 + $0xb8] sm:$0xf] }
  0x24   : > { %2018 = vmatmul.mubr.msk.bf16.gmra.mrb[4].mxu1 %vm260_vm1, %v2240_v17  ;;  %v937_v49 = vrot.slane %v936_v40, 4  ;;  %v977_v52 = vrot.slane %v975_v43, 5  ;;  %v951_v54 = vrot.slane %v950_v45, 4  ;;  %v983_v56 = vrot.slane %v981_v48, 5  ;;  %v1886_v2 = vld [vmem:[%s2478_s11 + $0xbc] sm:$0x1] }
  0x25   : > { %v964_v55 = vor.u32 %v963_v47, %v960_v46  ;;  %2023 = vmatprep.mubr.msk.bf16.mxu1 %vm260_vm1, %v2241_v53  ;;  %v986_v4 = vshrl.u32 %v1883_v60, 16  ;;  %v989_v7 = vshll.u32 %v1883_v60, 16  ;;  %v995_v8 = vshll.u32 %v1884_v61, 16  ;;  %v1887_v9 = vld [vmem:[%s2478_s11 + $0xc0] sm:$0xf]  ;;  %s2716_s9 = scalar_lea.vmem [#allocation2], %s1804_s8 }
  0x26   : > { %v942_v57 = vsel %vm2518_vm4, %v937_v49, %v941_v32  ;;  %v978_v58 = vor.u32 %v977_v52, %v974_v51  ;;  %v956_v62 = vsel %vm2518_vm4, %v951_v54, %v955_v36  ;;  %v2537_v10 = vld [vmem:[%s2796_s1 + $0x6] sm:$0x3]  ;;  %v1000_v13 = vshrl.u32 %v1885_v0, 16  ;;  %v1888_v17 = vld [vmem:[%s2478_s11 + $0xc4] sm:$0x1] }
  0x27   : > { %v965_v63 = vrot.slane %v964_v55, 4  ;;  %v1892_v5 = vcombine.low %v942_v57, %v956_v62  ;;  %v988_v12 = vrot.slane %v986_v4, 4  ;;  %v1003_v14 = vshll.u32 %v1885_v0, 16  ;;  %v1889_v22 = vld [vmem:[%s2478_s11 + $0xc8] sm:$0xf] }
  0x28   : > { %v979_v6 = vrot.slane %v978_v58, 4  ;;  %v991_v19 = vrot.slane %v989_v7, 5  ;;  %v997_v20 = vrot.slane %v995_v8, 5  ;;  %v1009_v21 = vshll.u32 %v1886_v2, 16  ;;  %v2549_v23 = vld [vmem:[%s2796_s1 + $0xe] sm:$0x3] }
  0x29   : > { %v970_v11 = vsel %vm2518_vm4, %v965_v63, %v969_v50  ;;  %2063 = vmatprep.mubr.msk.bf16.mxu0 %vm260_vm1, %v1892_v5  ;;  %v1002_v25 = vrot.slane %v1000_v13, 4  ;;  %v1005_v26 = vrot.slane %v1003_v14, 5  ;;  %v1890_v27 = vld [vmem:[%s2478_s11 + $0xcc] sm:$0x1]  ;;  %v1014_v28 = vshrl.u32 %v1887_v9, 16 }
  0x2a   : > { %v984_v18 = vsel %vm2518_vm4, %v979_v6, %v983_v56  ;;  %v992_v29 = vor.u32 %v991_v19, %v988_v12  ;;  %v1011_v30 = vrot.slane %v1009_v21, 5  ;;  %v1017_v31 = vshll.u32 %v1887_v9, 16  ;;  %v2245_v53 = vld [vmem:[%s2478_s11 + $0x8] ss:$8 sps:$4 sm:$0xff]   ;;  %v442_v54 = vld [vmem:[%s2478_s11] sm:$0xf] }
  0x2b   : > { %v1893_v24 = vcombine.low %v970_v11, %v984_v18  ;;  %v1023_v32 = vshll.u32 %v1888_v17, 16  ;;  %v1006_v33 = vor.u32 %v1005_v26, %v1002_v25  ;;  %v1016_v34 = vrot.slane %v1014_v28, 4  ;;  %v443_v56 = vld [vmem:[%s2478_s11 + $0x4] sm:$0x1]  ;;  %v444_v57 = vld [vmem:[%s2478_s11 + $0x8] sm:$0xf] }
  0x2c   : > { %2024 = vmatmul.mubr.msk.bf16.vlgmr.msra.gmra.mrb[0].mxu1 %vm260_vm1, %v2242_v59  ;;  %v1028_v35 = vshrl.u32 %v1889_v22, 16  ;;  %v1031_v36 = vshll.u32 %v1889_v22, 16  ;;  %v993_v37 = vrot.slane %v992_v29, 4  ;;  %v1019_v38 = vrot.slane %v1017_v31, 5  ;;  %v445_v58 = vld [vmem:[%s2478_s11 + $0xc] sm:$0x1] }
  0x2d   : > { %2032 = vmatpush3.bf16.msra.mxu1 %v2501_v16  ;;  %2064 = vmatmul.mubr.msk.bf16.vlgmr.msra.gmra.mrb[0].mxu0 %vm260_vm1, %v1893_v24  ;;  %v1037_v39 = vshll.u32 %v1890_v27, 16  ;;  %v2243_v16 = vld [vmem:[%s2478_s11 + $0x20] ss:$8 sps:$4 sm:$0xff]   ;;  %v1007_v40 = vrot.slane %v1006_v33, 4  ;;  %v1025_v46 = vrot.slane %v1023_v32, 5  ;;  %v462_v60 = vshrl.u32 %v442_v54, 16 }
  0x2e   : > { %2170 = vmatprep.subr.msk.bf16.mxu1 %vm273_vm0, %v2537_v10  ;;  %2072 = vmatpush3.bf16.msra.mxu0 %v2498_v15  ;;  %v1030_v41 = vrot.slane %v1028_v35, 4  ;;  %v1033_v42 = vrot.slane %v1031_v36, 5  ;;  %v998_v43 = vsel %vm2518_vm4, %v993_v37, %v997_v20  ;;  %v1020_v45 = vor.u32 %v1019_v38, %v1016_v34  ;;  %v2244_v15 = vld [vmem:[%s2478_s11 + $0x30] ss:$8 sps:$4 sm:$0xff]   ;;  %v447_v6 = vld [vmem:[%s2478_s11 + $0x14] sm:$0x1] }
  0x2f   : > { %2175 = vmatprep.subr.msk.bf16.mxu0 %vm273_vm0, %v2549_v23  ;;  %2027 = vmatprep.mubr.msk.bf16.mxu1 %vm260_vm1, %v2243_v16  ;;  %v1012_v47 = vsel %vm2518_vm4, %v1007_v40, %v1011_v30  ;;  %v1039_v49 = vrot.slane %v1037_v39, 5  ;;  %v465_v61 = vshll.u32 %v442_v54, 16  ;;  %v471_v62 = vshll.u32 %v443_v56, 16  ;;  %v446_v63 = vld [vmem:[%s2478_s11 + $0x10] sm:$0xf] }
  0x30   : > { %v1034_v48 = vor.u32 %v1033_v42, %v1030_v41  ;;  %v1894_v50 = vcombine.low %v998_v43, %v1012_v47  ;;  %v1021_v51 = vrot.slane %v1020_v45, 4  ;;  %v476_v2 = vshrl.u32 %v444_v57, 16  ;;  %v448_v11 = vld [vmem:[%s2478_s11 + $0x18] sm:$0xf]  ;;  %v449_v18 = vld [vmem:[%s2478_s11 + $0x1c] sm:$0x1] }
  0x31   : > { %v479_v4 = vshll.u32 %v444_v57, 16  ;;  %v485_v5 = vshll.u32 %v445_v58, 16  ;;  %v464_v7 = vrot.slane %v462_v60, 4  ;;  %v467_v8 = vrot.slane %v465_v61, 5  ;;  %v2246_v29 = vld [vmem:[%s2478_s11 + $0x18] ss:$8 sps:$4 sm:$0xff]  }
  0x32   : > { %v1035_v52 = vrot.slane %v1034_v48, 4  ;;  %2067 = vmatprep.mubr.msk.bf16.mxu0 %vm260_vm1, %v1894_v50  ;;  %v1026_v55 = vsel %vm2518_vm4, %v1021_v51, %v1025_v46  ;;  %v473_v9 = vrot.slane %v471_v62, 5  ;;  %v490_v12 = vshrl.u32 %v446_v63, 16  ;;  %v2247_v37 = vld [vmem:[%s2478_s11 + $0x28] ss:$8 sps:$4 sm:$0xff]  }
  0x33   : > { %v478_v13 = vrot.slane %v476_v2, 4  ;;  %v481_v14 = vrot.slane %v479_v4, 5  ;;  %v487_v17 = vrot.slane %v485_v5, 5  ;;  %v493_v19 = vshll.u32 %v446_v63, 16  ;;  %v450_v40 = vld [vmem:[%s2478_s11 + $0x20] sm:$0xf] }
  0x34   : > { %2028 = vmatmul.mubr.msk.bf16.gmra.mrb[4].mxu1 %vm260_vm1, %v2244_v15  ;;  %v1040_v59 = vsel %vm2518_vm4, %v1035_v52, %v1039_v49  ;;  %v468_v20 = vor.u32 %v467_v8, %v464_v7  ;;  %v492_v21 = vrot.slane %v490_v12, 4  ;;  %v499_v22 = vshll.u32 %v447_v6, 16  ;;  %v451_v45 = vld [vmem:[%s2478_s11 + $0x24] sm:$0x1]  ;;  %v452_v46 = vld [vmem:[%s2478_s11 + $0x28] sm:$0xf] }
  0x35   : > { %v1895_v0 = vcombine.low %v1026_v55, %v1040_v59  ;;  %v504_v24 = vshrl.u32 %v448_v11, 16  ;;  %v482_v25 = vor.u32 %v481_v14, %v478_v13  ;;  %v495_v26 = vrot.slane %v493_v19, 5  ;;  %v453_v48 = vld [vmem:[%s2478_s11 + $0x2c] sm:$0x1]  ;;  %v454_v55 = vld [vmem:[%s2478_s11 + $0x30] sm:$0xf] }
  0x36   : > { %v507_v27 = vshll.u32 %v448_v11, 16  ;;  %v513_v28 = vshll.u32 %v449_v18, 16  ;;  %v1306_v30 = vsel %vm273_vm0, %v2549_v23, 0  ;;  %v469_v31 = vrot.slane %v468_v20, 4  ;;  %v2596_v23 = vld [vmem:[%s2796_s1 + $0x10] sm:$0x3] }
  0x37   : > { %2068 = vmatmul.mubr.msk.bf16.gmra.mrb[4].mxu0 %vm260_vm1, %v1895_v0  ;;  %v501_v32 = vrot.slane %v499_v22, 5  ;;  %v506_v33 = vrot.slane %v504_v24, 4  ;;  %v483_v34 = vrot.slane %v482_v25, 4  ;;  %v496_v35 = vor.u32 %v495_v26, %v492_v21  ;;  %v455_v60 = vld [vmem:[%s2478_s11 + $0x34] sm:$0x1] }
  0x38   : > { %2073 = vmatprep.mubr.msk.bf16.mxu0 %vm260_vm1, %v2245_v53  ;;  %v509_v36 = vrot.slane %v507_v27, 5  ;;  %v474_v38 = vsel %vm2518_vm4, %v469_v31, %v473_v9  ;;  %v515_v39 = vrot.slane %v513_v28, 5  ;;  %v719_v16 = vsel %vm273_vm0, %v2537_v10, 0  ;;  %v2248_v62 = vld [vmem:[%s2478_s11 + $0x38] ss:$8 sps:$4 sm:$0xff]  }
  0x39   : > { %v488_v41 = vsel %vm2518_vm4, %v483_v34, %v487_v17  ;;  %v497_v42 = vrot.slane %v496_v35, 4  ;;  %v518_v15 = vshrl.u32 %v450_v40, 16  ;;  %v521_v49 = vshll.u32 %v450_v40, 16  ;;  %v456_v0 = vld [vmem:[%s2478_s11 + $0x38] sm:$0xf] }
  0x3a   : > { %v510_v43 = vor.u32 %v509_v36, %v506_v33  ;;  %v1833_v47 = vcombine.low %v474_v38, %v488_v41  ;;  %v527_v10 = vshll.u32 %v451_v45, 16  ;;  %v532_v50 = vshrl.u32 %v452_v46, 16  ;;  %v457_v2 = vld [vmem:[%s2478_s11 + $0x3c] sm:$0x1]  ;;  %v2249_v14 = vld [vmem:[%s2478_s11 + $0x50] ss:$8 sps:$4 sm:$0xff]  }
  0x3b   : > { %v502_v51 = vsel %vm2518_vm4, %v497_v42, %v501_v32  ;;  %v520_v53 = vrot.slane %v518_v15, 4  ;;  %v535_v54 = vshll.u32 %v452_v46, 16  ;;  %v523_v56 = vrot.slane %v521_v49, 5  ;;  %v2250_v35 = vld [vmem:[%s2478_s11 + $0x60] ss:$8 sps:$4 sm:$0xff]  }
  0x3c   : > { %v511_v52 = vrot.slane %v510_v43, 4  ;;  %2033 = vmatprep.mubr.msk.bf16.mxu1 %vm260_vm1, %v1833_v47  ;;  %v529_v57 = vrot.slane %v527_v10, 5  ;;  %v534_v58 = vrot.slane %v532_v50, 4  ;;  %v541_v59 = vshll.u32 %v453_v48, 16  ;;  %v1935_v40 = vld [vmem:[%s2478_s11 + $0xc] sm:$0x1] }
  0x3d   : > { %v537_v63 = vrot.slane %v535_v54, 5  ;;  %v546_v4 = vshrl.u32 %v454_v55, 16  ;;  %v524_v6 = vor.u32 %v523_v56, %v520_v53  ;;  %v549_v8 = vshll.u32 %v454_v55, 16  ;;  %v1936_v41 = vld [vmem:[%s2478_s11 + $0x10] sm:$0xf] }
  0x3e   : > { %v516_v61 = vsel %vm2518_vm4, %v511_v52, %v515_v39  ;;  %v543_v7 = vrot.slane %v541_v59, 5  ;;  %v555_v12 = vshll.u32 %v455_v60, 16  ;;  %v560_v13 = vshrl.u32 %v456_v0, 16  ;;  %v2253_v39 = vld [vmem:[%s2478_s11 + $0x70] ss:$8 sps:$4 sm:$0xff]  }
  0x3f   : > { %2074 = vmatmul.mubr.msk.bf16.vlgmr.msra.gmra.mrb[0].mxu0 %vm260_vm1, %v2246_v29  ;;  %v1834_v5 = vcombine.low %v502_v51, %v516_v61  ;;  %v538_v9 = vor.u32 %v537_v63, %v534_v58  ;;  %v548_v11 = vrot.slane %v546_v4, 4  ;;  %v525_v17 = vrot.slane %v524_v6, 4  ;;  %v1937_v42 = vld [vmem:[%s2478_s11 + $0x14] sm:$0x1]  ;;  %v1938_v48 = vld [vmem:[%s2478_s11 + $0x18] sm:$0xf] }
  0x40   : > { %2082 = vmatpush3.bf16.msra.mxu0 %v1306_v30  ;;  %2077 = vmatprep.mubr.msk.bf16.mxu0 %vm260_vm1, %v2247_v37  ;;  %v551_v18 = vrot.slane %v549_v8, 5  ;;  %v563_v19 = vshll.u32 %v456_v0, 16  ;;  %v569_v20 = vshll.u32 %v457_v2, 16  ;;  %v562_v22 = vrot.slane %v560_v13, 4  ;;  %v2251_v37 = vld [vmem:[%s2478_s11 + $0x90] ss:$8 sps:$4 sm:$0xff]  }
  0x41   : > { %2176 = vmatprep.subr.msk.bf16.mxu0 %vm273_vm0, %v2596_v23  ;;  %2034 = vmatmul.mubr.msk.bf16.vlgmr.msra.gmra.mrb[0].mxu1 %vm260_vm1, %v1834_v5  ;;  %v539_v21 = vrot.slane %v538_v9, 4  ;;  %v530_v24 = vsel %vm2518_vm4, %v525_v17, %v529_v57  ;;  %v557_v26 = vrot.slane %v555_v12, 5  ;;  %v1536_v34 = vsel %vm273_vm0, %v2596_v23, 0  ;;  %v1939_v50 = vld [vmem:[%s2478_s11 + $0x1c] sm:$0x1] }
  0x42   : > { %2042 = vmatpush3.bf16.msra.mxu1 %v719_v16  ;;  %v552_v25 = vor.u32 %v551_v18, %v548_v11  ;;  %v565_v27 = vrot.slane %v563_v19, 5  ;;  %v571_v32 = vrot.slane %v569_v20, 5  ;;  %v1934_v16 = vld [vmem:[%s2478_s11 + $0x8] sm:$0xf]  ;;  %v1407_v23 = vshll.u32 %v1935_v40, 16 }
  0x43   : > { %2172 = vmatprep.subr.msk.bf16.mxu1 %vm273_vm0, %v2455_v1  ;;  %v544_v28 = vsel %vm2518_vm4, %v539_v21, %v543_v7  ;;  %v1398_v43 = vshrl.u32 %v1934_v16, 16  ;;  %v1401_v45 = vshll.u32 %v1934_v16, 16  ;;  %v1412_v46 = vshrl.u32 %v1936_v41, 16  ;;  %v1940_v51 = vld [vmem:[%s2478_s11 + $0x20] sm:$0xf] }
  0x44   : > { %v1835_v29 = vcombine.low %v530_v24, %v544_v28  ;;  %v553_v30 = vrot.slane %v552_v25, 4  ;;  %v566_v31 = vor.u32 %v565_v27, %v562_v22  ;;  %v1415_v15 = vshll.u32 %v1936_v41, 16  ;;  %v2252_v52 = vld [vmem:[%s2478_s11 + $0xa0] ss:$8 sps:$4 sm:$0xff]   ;;  %v1941_v58 = vld [vmem:[%s2478_s11 + $0x24] sm:$0x1] }
  0x45   : > { %v1421_v47 = vshll.u32 %v1937_v42, 16  ;;  %v1400_v49 = vrot.slane %v1398_v43, 4  ;;  %v1403_v10 = vrot.slane %v1401_v45, 5  ;;  %v2254_v53 = vld [vmem:[%s2478_s11 + $0x80] ss:$8 sps:$4 sm:$0xff]   ;;  %v1409_v54 = vrot.slane %v1407_v23, 5 }
  0x46   : > { %2037 = vmatprep.mubr.msk.bf16.mxu1 %vm260_vm1, %v1835_v29  ;;  %v558_v1 = vsel %vm2518_vm4, %v553_v30, %v557_v26  ;;  %v567_v33 = vrot.slane %v566_v31, 4  ;;  %v1414_v55 = vrot.slane %v1412_v46, 4  ;;  %v1417_v56 = vrot.slane %v1415_v15, 5  ;;  %v2255_v5 = vld [vmem:[%s2478_s11 + $0xb0] ss:$8 sps:$4 sm:$0xff]  }
  0x47   : > { %2078 = vmatmul.mubr.msk.bf16.gmra.mrb[4].mxu0 %vm260_vm1, %v2248_v62  ;;  %v1423_v57 = vrot.slane %v1421_v47, 5  ;;  %v1404_v59 = vor.u32 %v1403_v10, %v1400_v49  ;;  %v1426_v60 = vshrl.u32 %v1938_v48, 16  ;;  %v1429_v61 = vshll.u32 %v1938_v48, 16  ;;  %v1942_v17 = vld [vmem:[%s2478_s11 + $0x28] sm:$0xf] }
  0x48   : > { %2083 = vmatprep.mubr.msk.bf16.mxu0 %vm260_vm1, %v2249_v14  ;;  %v572_v36 = vsel %vm2518_vm4, %v567_v33, %v571_v32  ;;  %v1435_v62 = vshll.u32 %v1939_v50, 16  ;;  %v1418_v63 = vor.u32 %v1417_v56, %v1414_v55  ;;  %v1440_v0 = vshrl.u32 %v1940_v51, 16  ;;  %v1943_v20 = vld [vmem:[%s2478_s11 + $0x2c] sm:$0x1]  ;;  %v1944_v21 = vld [vmem:[%s2478_s11 + $0x30] sm:$0xf] }
  0x49   : > { %v1836_v38 = vcombine.low %v558_v1, %v572_v36  ;;  %v1443_v2 = vshll.u32 %v1940_v51, 16  ;;  %v1449_v4 = vshll.u32 %v1941_v58, 16  ;;  %v1405_v6 = vrot.slane %v1404_v59, 4  ;;  %v1945_v22 = vld [vmem:[%s2478_s11 + $0x34] sm:$0x1] }
  0x4a   : > { %v1428_v7 = vrot.slane %v1426_v60, 4  ;;  %v1431_v8 = vrot.slane %v1429_v61, 5  ;;  %v1437_v9 = vrot.slane %v1435_v62, 5  ;;  %v1419_v11 = vrot.slane %v1418_v63, 4  ;;  %v2256_v32 = vld [vmem:[%s2478_s11 + $0xc0] ss:$8 sps:$4 sm:$0xff]  }
  0x4b   : > { %2038 = vmatmul.mubr.msk.bf16.gmra.mrb[4].mxu1 %vm260_vm1, %v1836_v38  ;;  %v1442_v12 = vrot.slane %v1440_v0, 4  ;;  %v1445_v13 = vrot.slane %v1443_v2, 5  ;;  %v1451_v14 = vrot.slane %v1449_v4, 5  ;;  %v1410_v18 = vsel %vm2518_vm4, %v1405_v6, %v1409_v54  ;;  %v1946_v36 = vld [vmem:[%s2478_s11 + $0x38] sm:$0xf] }
  0x4c   : > { %2043 = vmatprep.mubr.msk.bf16.mxu1 %vm260_vm1, %v2251_v37  ;;  %v1432_v19 = vor.u32 %v1431_v8, %v1428_v7  ;;  %v1424_v24 = vsel %vm2518_vm4, %v1419_v11, %v1423_v57  ;;  %v1454_v26 = vshrl.u32 %v1942_v17, 16  ;;  %v1457_v27 = vshll.u32 %v1942_v17, 16  ;;  %v1947_v16 = vld [vmem:[%s2478_s11 + $0x3c] sm:$0x1]  ;;  %v1948_v43 = vld [vmem:[%s2478_s11 + $0x40] sm:$0xf] }
  0x4d   : > { %v1446_v25 = vor.u32 %v1445_v13, %v1442_v12  ;;  %v1951_v28 = vcombine.low %v1410_v18, %v1424_v24  ;;  %v1463_v30 = vshll.u32 %v1943_v20, 16  ;;  %v1468_v31 = vshrl.u32 %v1944_v21, 16  ;;  %v1949_v45 = vld [vmem:[%s2478_s11 + $0x44] sm:$0x1]  ;;  %v2257_v15 = vld [vmem:[%s2478_s11 + $0xf8] ss:$8 sps:$4 sm:$0xff]  }
  0x4e   : > { %v1433_v29 = vrot.slane %v1432_v19, 4  ;;  %v1456_v33 = vrot.slane %v1454_v26, 4  ;;  %v1482_v23 = vshrl.u32 %v1946_v36, 16  ;;  %v1485_v48 = vshll.u32 %v1946_v36, 16  ;;  %v2258_v8 = vld [vmem:[%s2478_s11 + $0x108] ss:$8 sps:$4 sm:$0xff]  }
  0x4f   : > { %2084 = vmatmul.mubr.msk.bf16.vlgmr.msra.gmra.mrb[0].mxu0 %vm260_vm1, %v2250_v35  ;;  %v1447_v1 = vrot.slane %v1446_v25, 4  ;;  %v1471_v35 = vshll.u32 %v1944_v21, 16  ;;  %v1465_v37 = vrot.slane %v1463_v30, 5  ;;  %v1470_v38 = vrot.slane %v1468_v31, 4  ;;  %v1959_v18 = vld [vmem:[%s2797_s2] ss:$0 sm:$0xff] }
  0x50   : > { %2092 = vmatpush3.bf16.msra.mxu0 %v1536_v34  ;;  %2087 = vmatprep.mubr.msk.bf16.mxu0 %vm260_vm1, %v2253_v39  ;;  %v1459_v34 = vrot.slane %v1457_v27, 5  ;;  %v1477_v39 = vshll.u32 %v1945_v22, 16  ;;  %v1491_v49 = vshll.u32 %v1947_v16, 16  ;;  %v1484_v51 = vrot.slane %v1482_v23, 4  ;;  %s1698_s11 = sshll.u32 %s2716_s9, 4  ;;  %s2738_s11 = int_to_ptr.vmem [resolvable:$true] %s1698_s11 }
  0x51   : > { %v1452_v40 = vsel %vm2518_vm4, %v1447_v1, %v1451_v14  ;;  %v1473_v42 = vrot.slane %v1471_v35, 5  ;;  %v1499_v54 = vshll.u32 %v1948_v43, 16  ;;  %v1505_v55 = vshll.u32 %v1949_v45, 16  ;;  %s2291_s23 = scalar_lea.vmem %s2738_s11, 1024  ;;  %p2298_p1 = scmp.lt.s32.totalorder %s2738_s11, %s2296_s27 }
  0x52   : > { %v1460_v41 = vor.u32 %v1459_v34, %v1456_v33  ;;  %v1479_v47 = vrot.slane %v1477_v39, 5  ;;  %v1493_v60 = vrot.slane %v1491_v49, 5  ;;  %p2292_p12 = scmp.ne.s32.totalorder %s2738_s11, %s2291_s23  ;;  %p2299_p2 = scmp.lt.s32.totalorder %s2297_s28, %s2291_s23 }
  0x53   : > { %2044 = vmatmul.mubr.msk.bf16.vlgmr.msra.gmra.mrb[0].mxu1 %vm260_vm1, %v2252_v52  ;;  %v1474_v50 = vor.u32 %v1473_v42, %v1470_v38  ;;  %v1496_v52 = vshrl.u32 %v1948_v43, 16  ;;  %v1501_v61 = vrot.slane %v1499_v54, 5  ;;  %v1507_v4 = vrot.slane %v1505_v55, 5 }
  0x54   : > { %2102 = vmatpush3.bf16.msra.mxu1 %v2464_v3  ;;  %2047 = vmatprep.mubr.msk.bf16.mxu1 %vm260_vm1, %v2255_v5  ;;  %v1438_v3 = vsel %vm2518_vm4, %v1433_v29, %v1437_v9  ;;  %v1461_v10 = vrot.slane %v1460_v41, 4  ;;  %p2293_p13 = pnand %p2292_p12, %p2434_p4  ;;  %p2300_p3 = por %p2299_p2, %p2298_p1 }
  0x55   : > { %v1952_v46 = vcombine.low %v1438_v3, %v1452_v40  ;;  %v1475_v57 = vrot.slane %v1474_v50, 4  ;;  %v1498_v58 = vrot.slane %v1496_v52, 4 }
  0x56   : > { %v1466_v56 = vsel %vm2518_vm4, %v1461_v10, %v1465_v37  ;;  %p2294_p0 = pneg %p2293_p13 }
  0x57   : > { %2088 = vmatmul.mubr.msk.bf16.gmra.mrb[4].mxu0 %vm260_vm1, %v2254_v53  ;;  %v1487_v53 = vrot.slane %v1485_v48, 5  ;;  %v1480_v62 = vsel %vm2518_vm4, %v1475_v57, %v1479_v47  ;;  %v1502_v2 = vor.u32 %v1501_v61, %v1498_v58 }
  0x58   : > { %2093 = vmatprep.mubr.msk.bf16.mxu0 %vm260_vm1, %v1951_v28  ;;  %v1953_v63 = vcombine.low %v1466_v56, %v1480_v62  ;;  %p2301_p5 = pnand %p2300_p3, %p2294_p0 }
  0x59   : > { %v1488_v59 = vor.u32 %v1487_v53, %v1484_v51  ;;  %v1503_v6 = vrot.slane %v1502_v2, 4 }
  0x5b   : > { %2048 = vmatmul.mubr.msk.bf16.gmra.mrb[4].mxu1 %vm260_vm1, %v2256_v32  ;;  %v1489_v0 = vrot.slane %v1488_v59, 4  ;;  %v1508_v7 = vsel %vm2518_vm4, %v1503_v6, %v1507_v4 }
  0x5c   : > { %2057 = vmatprep.mubr.msk.bf16.mxu1 %vm260_vm1, %v2257_v15 }
  0x5d   : > { %v1494_v5 = vsel %vm2518_vm4, %v1489_v0, %v1493_v60 }
  0x5e   : > { %v1954_v9 = vcombine.low %v1494_v5, %v1508_v7 }
  0x5f   : > { %2094 = vmatmul.mubr.msk.bf16.vlgmr.msra.gmra.mrb[0].mxu0 %vm260_vm1, %v1952_v46 }
  0x60   : > { %2097 = vmatprep.mubr.msk.bf16.mxu0 %vm260_vm1, %v1953_v63 }
  0x67   : > { %2098 = vmatmul.mubr.msk.bf16.gmra.mrb[4].mxu0 %vm260_vm1, %v1954_v9  ;;  %2058 = vmatmul.mubr.msk.bf16.vlgmr.msra.gmra.mrb[4].mxu1 %vm260_vm1, %v2258_v8 }
 0x126   : > { %v2045_v11 = vpop.f32.mrb[0].mxu1 }
 0x127   : > { %v755_v12 = vpop.f32.mrb[1].mxu1 }
 0x128   : > { %v2046_v13 = vpop.f32.mrb[2].mxu1 }
 0x129   : > { %v758_v14 = vpop.f32.mrb[3].mxu1 }
 0x132   : > { %v2095_v17 = vpop.f32.mrb[0].mxu0 }
 0x133   : > { %v2103_v19 = vadd.f32 %v2095_v17, %v2045_v11  ;;  %v1572_v20 = vpop.f32.mrb[1].mxu0 }
 0x134   : > { %v2104_v21 = vadd.f32 %v1572_v20, %v755_v12  ;;  %v2096_v44 = vpop.f32.mrb[2].mxu0 }
 0x135   : > { %v2693_v22 = vadd.f32 %v2103_v19, %v1959_v18  ;;  %v2105_v24 = vadd.f32 %v2096_v44, %v2046_v13  ;;  %v1575_v25 = vpop.f32.mrb[3].mxu0 }
 0x136   : > { %v2695_v26 = vadd.f32 %v2104_v21, %v1959_v18  ;;  %v2106_v27 = vadd.f32 %v1575_v25, %v758_v14 }
 0x137   : > { %v1628_v28 = vsub.f32 0.0, %v2693_v22  ;;  %v2698_v29 = vadd.f32 %v2105_v24, %v1959_v18 }
 0x138   : > { %v1626_v30 = vsub.f32 0.0, %v2695_v26  ;;  %v2701_v31 = vadd.f32 %v2106_v27, %v1959_v18 }
 0x139   : > { %v1638_v32 = vmul.f32 1.442695, %v1628_v28  ;;  %v1629_v1 = vsub.f32 0.0, %v2698_v29 }
 0x13a   : > { %v1634_v33 = vmul.f32 1.442695, %v1626_v30  ;;  %v1627_v34 = vsub.f32 0.0, %v2701_v31  ;;  %v2099_v3 = vpop.f32.mrb[4].mxu0  ;;  %v2059_v38 = vpop.f32.mrb[4].mxu1 }
 0x13b   : > { %2259 = vpow2.f32 %v1638_v32  ;;  %v1640_v35 = vmul.f32 1.442695, %v1629_v1  ;;  %v1588_v37 = vpop.f32.mrb[5].mxu0  ;;  %v2107_v16 = vadd.f32 %v2099_v3, %v2059_v38  ;;  %v890_v40 = vpop.f32.mrb[5].mxu1 }
 0x13c   : > { %2261 = vpow2.f32 %v1634_v33  ;;  %v1636_v36 = vmul.f32 1.442695, %v1627_v34  ;;  %v2100_v39 = vpop.f32.mrb[6].mxu0  ;;  %v2108_v42 = vadd.f32 %v1588_v37, %v890_v40  ;;  %v2060_v43 = vpop.f32.mrb[6].mxu1 }
 0x13d   : > { %2263 = vpow2.f32 %v1640_v35  ;;  %v1591_v41 = vpop.f32.mrb[7].mxu0  ;;  %v1624_v45 = vadd.f32 %v2107_v16, %v1959_v18  ;;  %v2109_v23 = vadd.f32 %v2100_v39, %v2060_v43  ;;  %v893_v46 = vpop.f32.mrb[7].mxu1 }
 0x13e   : > { %2265 = vpow2.f32 %v1636_v36  ;;  %v2705_v15 = vadd.f32 %v2108_v42, %v1959_v18  ;;  %v2110_v47 = vadd.f32 %v1591_v41, %v893_v46 }
 0x13f   : > { %v1632_v48 = vsub.f32 0.0, %v1624_v45  ;;  %v1625_v49 = vadd.f32 %v2109_v23, %v1959_v18 }
 0x140   : > { %v1630_v10 = vsub.f32 0.0, %v2705_v15  ;;  %v2708_v50 = vadd.f32 %v2110_v47, %v1959_v18 }
 0x141   : > { %v1646_v52 = vmul.f32 1.442695, %v1632_v48  ;;  %v1633_v53 = vsub.f32 0.0, %v1625_v49 }
 0x142   : > { %v1631_v56 = vsub.f32 0.0, %v2708_v50  ;;  %v1642_v61 = vmul.f32 1.442695, %v1630_v10 }
 0x143   : > { %2267 = vpow2.f32 %v1646_v52  ;;  %v1648_v63 = vmul.f32 1.442695, %v1633_v53 }
 0x144   : > { %v1644_v0 = vmul.f32 1.442695, %v1631_v56 }
 0x145   : > { %v2260_v51 = vpop.eup %2259 }
 0x146   : > { %v2262_v54 = vpop.eup %2261  ;;  %v1652_v55 = vadd.f32 1.0, %v2260_v51 }
 0x147   : > { %v2264_v57 = vpop.eup %2263  ;;  %v1650_v58 = vadd.f32 1.0, %v2262_v54 }
 0x148   : > { %v2266_v59 = vpop.eup %2265  ;;  %2269 = vrcp.f32 %v1652_v55  ;;  %v1653_v60 = vadd.f32 1.0, %v2264_v57 }
 0x149   : > { %2271 = vrcp.f32 %v1650_v58  ;;  %v1651_v62 = vadd.f32 1.0, %v2266_v59 }
 0x14a   : > { %2273 = vrcp.f32 %v1653_v60 }
 0x14b   : > { %2275 = vrcp.f32 %v1651_v62 }
 0x14c   : > { %2277 = vpow2.f32 %v1642_v61 }
 0x14d   : > { %2279 = vpow2.f32 %v1648_v63  ;;  %v2268_v2 = vpop.eup %2267 }
 0x14e   : > { %2281 = vpow2.f32 %v1644_v0  ;;  %v1656_v5 = vadd.f32 1.0, %v2268_v2 }
 0x150   : > { %2283 = vrcp.f32 %v1656_v5 }
 0x152   : > { %v2270_v4 = vpop.eup %2269 }
 0x153   : > { %v2272_v6 = vpop.eup %2271  ;;  %v1668_v7 = vmul.f32 %v2270_v4, %v2693_v22 }
 0x154   : > { %v2274_v8 = vpop.eup %2273  ;;  %v1666_v9 = vmul.f32 %v2272_v6, %v2695_v26 }
 0x155   : > { %v2276_v11 = vpop.eup %2275  ;;  %1677 = vst.msk [vmem:[%s2716_s9 + $0x10] sm:$0xff] %vm1674_vm5, %v1668_v7  ;;  %v1669_v12 = vmul.f32 %v2274_v8, %v2698_v29 }
 0x156   : > { %v2278_v13 = vpop.eup %2277  ;;  %1675 = vst.msk [vmem:[%s2716_s9] sm:$0xff] %vm1674_vm5, %v1666_v9  ;;  %v1667_v14 = vmul.f32 %v2276_v11, %v2701_v31 }
 0x157   : > { %v2280_v17 = vpop.eup %2279  ;;  %1678 = vst.msk [vmem:[%s2716_s9 + $0x18] sm:$0xff] %vm1674_vm5, %v1669_v12  ;;  %v1654_v18 = vadd.f32 1.0, %v2278_v13 }
 0x158   : > { %v2282_v19 = vpop.eup %2281  ;;  %1676 = vst.msk [vmem:[%s2716_s9 + $0x8] sm:$0xff] %vm1674_vm5, %v1667_v14  ;;  %v1657_v20 = vadd.f32 1.0, %v2280_v17 }
 0x159   : > { %2285 = vrcp.f32 %v1654_v18  ;;  %v1655_v21 = vadd.f32 1.0, %v2282_v19 }
 0x15a   : > { %2287 = vrcp.f32 %v1657_v20  ;;  %v2284_v44 = vpop.eup %2283 }
 0x15b   : > { %2289 = vrcp.f32 %v1655_v21  ;;  %v1672_v22 = vmul.f32 %v2284_v44, %v1624_v45 }
 0x15d   : > { %1681 = vst.msk [vmem:[%s2716_s9 + $0x30] sm:$0xff] %vm1674_vm5, %v1672_v22 }
 0x163   : > { %v2286_v24 = vpop.eup %2285 }
 0x164   : > { %v2288_v25 = vpop.eup %2287  ;;  %v1670_v26 = vmul.f32 %v2286_v24, %v2705_v15 }
 0x165   : > { %v2290_v27 = vpop.eup %2289  ;;  %v1673_v28 = vmul.f32 %v2288_v25, %v1625_v49 }
 0x166   : > { %1679 = vst.msk [vmem:[%s2716_s9 + $0x20] sm:$0xff] %vm1674_vm5, %v1670_v26  ;;  %v1671_v29 = vmul.f32 %v2290_v27, %v2708_v50 }
 0x167   : > { %1682 = vst.msk [vmem:[%s2716_s9 + $0x38] sm:$0xff] %vm1674_vm5, %v1673_v28 }
 0x168   : > { %1680 = vst.msk [vmem:[%s2716_s9 + $0x28] sm:$0xff] %vm1674_vm5, %v1671_v29 }
 0x169   : > { %2304 = shalt.err (!%p2301_p5)
}
 0x16a   : > { %s2305_s29 = scalar_lea.hbm %s2736_s21, 1024  ;;  %s2309_s5 = scalar_lea.hbm %s2798_s3, 2048 }
 0x16b   : > { %p2306_p6 = scmp.ne.s32.totalorder %s2736_s21, %s2305_s29  ;;  %p2310_p10 = scmp.lt.u32.totalorder %s2736_s21, %s2798_s3 }
 0x16c   : > { %p2311_p11 = scmp.lt.u32.totalorder %s2309_s5, %s2305_s29  ;;  %p2313_p13 = scmp.lt.u32.totalorder %s2305_s29, %s2736_s21 }
 0x16d   : > { %p2307_p7 = pnand %p2306_p6, %p2434_p4 }
 0x16e   : > { %p2312_p12 = por %p2311_p11, %p2310_p10 }
 0x16f   : > { %p2308_p9 = pneg %p2307_p7 }
 0x170   : > { %p2314_p0 = por %p2313_p13, %p2312_p12 }
 0x172   : > { %p2315_p1 = pnand %p2314_p0, %p2308_p9 }
 0x174   : > { %2318 = shalt.err (!%p2315_p1)
}
 0x175   : > { %s2372_s8 = smov 128   ;;  %s2373_s9 = smov 8  }
 0x176   : > { %2178 = dma.vmem_to_hbm [thread:$0]  (%p2434_p4), %s2738_s11, 1024, %s2736_s21, %s2749_s15, %s2372_s8, %s2372_s8, %s2373_s9  }
 0x177 PF: > { %p2184_p2 = scmp.ge.s32.totalorder %s2369_s17, 2  ;;  %s1713_s10 = sand.u32 1, %s2349_s12  }
 0x178   : > { %s1714_s18 = scalar_lea.sflag [#allocation3], %s1713_s10 }
 0x179   : > { %p2181_p3 = pnand %p2184_p2, %p2441_p8 }
 0x17b   : > { %2344 = dma.done.wait (!%p2181_p3), %s1714_s18, 1024  }
 0x17c   : > { %2346 = vsyncadd (!%p2181_p3), %s1714_s18, 4294966272  ;;  %s16_s17 = sadd.s32 1, %s2369_s17   ;;  %s2803_s12 = smov %s2353_s13 }
 0x17d   : > { %p13_p5 = scmp.ge.s32.totalorder %s16_s17, 4   ;;  %s2804_s13 = smov %s2357_s14 }
 0x17e   : > { %s2805_s14 = smov %s2447_s25  ;;  %s2806_s15 = smov %s2365_s16 }
 0x17f   : > { %s2807_s16 = smov %s2809_s20  ;;  %15 = sbr.rel (!%p13_p5) target bundleno = 4 (0x4), region = 86 }
 0x186   :  { %1719 = vsyncpa [#allocation3], 1 }
 0x187   :  { %1721 = vsyncpa [#allocation3 + $0x1], 1 }

</bundles_post_ra>
